<compile_context>
chip_gen: v5e
topology: v5e:2x2
jax: 0.10.0
libtpu: 0.0.40
codegen_flags: <defaults>
</compile_context>

<pallas_src>
import jax
import jax.numpy as jnp
from jax.experimental import pallas as pl
from jax.experimental.pallas import tpu as pltpu

LANE = 128     # vreg lane width
SUBLANE = 8    # vreg sublane height (f32)


def _round_up(v, m):
    return (v + m - 1) // m * m


def rain_model_kernel(x_ref, w1_ref, b1_ref, w2_ref, b2_ref, out_ref):
    # hidden = sigmoid(x @ W1 + b1): bf16 MXU matmul, f32 accumulate.
    x = x_ref[...].astype(jnp.bfloat16)
    h = jnp.dot(x, w1_ref[...], preferred_element_type=jnp.float32)
    h = jax.nn.sigmoid(h + b1_ref[...])          # bias + sigmoid in f32
    # out = hidden @ W2 + b2 (no activation, matches the PyTorch forward).
    o = jnp.dot(h.astype(jnp.bfloat16), w2_ref[...],
                preferred_element_type=jnp.float32)
    out_ref[...] = (o + b2_ref[...]).astype(out_ref.dtype)


def rain_model_forward(x, w1, b1, w2, b2, *, tile_b=512):
    """out = sigmoid(x @ w1 + b1) @ w2 + b2.

    x : [B, in]    f32
    w1: [in, hid]  f32   (transpose of PyTorch linear1.weight)
    b1: [hid]      f32
    w2: [hid, out] f32   (transpose of PyTorch linear2.weight)
    b2: [out]      f32
    """
    B, in_size = x.shape
    hid = w1.shape[1]
    out_size = w2.shape[1]

    # ---- lane-dense padding: hidden / output -> multiples of 128 ----------
    hid_p = _round_up(hid, LANE)
    out_p = _round_up(out_size, LANE)

    w1_p = jnp.zeros((in_size, hid_p), jnp.bfloat16).at[:, :hid].set(
        w1.astype(jnp.bfloat16))
    b1_p = jnp.zeros((1, hid_p), jnp.float32).at[:, :hid].set(
        b1.reshape(1, -1).astype(jnp.float32))
    # Zero rows for padded hidden units: sigmoid(0)=0.5 contributes 0.5*0 = 0.
    w2_p = jnp.zeros((hid_p, out_p), jnp.bfloat16).at[:hid, :out_size].set(
        w2.astype(jnp.bfloat16))
    b2_p = jnp.zeros((1, out_p), jnp.float32).at[:, :out_size].set(
        b2.reshape(1, -1).astype(jnp.float32))

    # ---- batch tiling (large tiles amortize the ~0.35 us/step overhead) ---
    tb = min(tile_b, _round_up(B, SUBLANE))
    B_p = _round_up(B, tb)
    x_p = x if B_p == B else jnp.zeros((B_p, in_size), x.dtype).at[:B].set(x)

    grid = (B_p // tb,)

    cost = pl.CostEstimate(
        flops=2 * B_p * (in_size * hid_p + hid_p * out_p),
        transcendentals=B_p * hid_p,                       # sigmoid -> exp
        bytes_accessed=(x_p.size * 4 + w1_p.size * 2 + w2_p.size * 2
                        + b1_p.size * 4 + b2_p.size * 4 + B_p * out_p * 4),
    )

    vmem = pltpu.MemorySpace.VMEM
    out_padded = pl.pallas_call(
        rain_model_kernel,
        out_shape=jax.ShapeDtypeStruct((B_p, out_p), jnp.float32),
        grid=grid,
        in_specs=[
            # x: streamed batch tiles
            pl.BlockSpec((tb, in_size), lambda i: (i, 0), memory_space=vmem),
            # weights / biases: constant index_map -> stay VMEM-resident
            pl.BlockSpec((in_size, hid_p), lambda i: (0, 0), memory_space=vmem),
            pl.BlockSpec((1, hid_p), lambda i: (0, 0), memory_space=vmem),
            pl.BlockSpec((hid_p, out_p), lambda i: (0, 0), memory_space=vmem),
            pl.BlockSpec((1, out_p), lambda i: (0, 0), memory_space=vmem),
        ],
        out_specs=pl.BlockSpec((tb, out_p), lambda i: (i, 0), memory_space=vmem),
        compiler_params=pltpu.CompilerParams(
            dimension_semantics=("parallel",)),
        cost_estimate=cost,
    )(x_p, w1_p, b1_p, w2_p, b2_p)

    # Strip batch + lane padding.
    return out_padded[:B, :out_size]


if __name__ == "__main__":
    # Shapes implied by the module: x [batch, inputSize], hidden layer, output.
    batch, input_size, hidden, output_size = 8, 16, 32, 4

    key = jax.random.PRNGKey(0)
    k_x, k_w1, k_b1, k_w2, k_b2 = jax.random.split(key, 5)

    x = jax.random.normal(k_x, (batch, input_size), dtype=jnp.float32)

    # Deterministic parameter init (uniform, roughly matching nn.Linear scale).
    lim1 = 1.0 / (input_size ** 0.5)
    lim2 = 1.0 / (hidden ** 0.5)
    w1 = jax.random.uniform(k_w1, (input_size, hidden), minval=-lim1, maxval=lim1)
    b1 = jax.random.uniform(k_b1, (hidden,), minval=-lim1, maxval=lim1)
    w2 = jax.random.uniform(k_w2, (hidden, output_size), minval=-lim2, maxval=lim2)
    b2 = jax.random.uniform(k_b2, (output_size,), minval=-lim2, maxval=lim2)

    out = rain_model_forward(x, w1, b1, w2, b2)
    jax.block_until_ready(out)
    assert out.shape == (batch, output_size)

    # Reference with the same bf16 matmul inputs / f32 accumulation.
    h_ref = jax.nn.sigmoid(
        jnp.dot(x.astype(jnp.bfloat16), w1.astype(jnp.bfloat16),
                preferred_element_type=jnp.float32) + b1)
    ref_bf16 = jnp.dot(h_ref.astype(jnp.bfloat16), w2.astype(jnp.bfloat16),
                       preferred_element_type=jnp.float32) + b2
    assert jnp.allclose(out, ref_bf16, atol=1e-3, rtol=1e-3)

    # Loose sanity check against the pure-f32 reference.
    ref_f32 = jax.nn.sigmoid(x @ w1 + b1) @ w2 + b2
    assert jnp.allclose(out, ref_f32, atol=3e-2, rtol=3e-2)

    print("KERNEL_OK")
</pallas_src>

<mosaic_0001>
module attributes {stable_mosaic.version = 11 : i64} {
  func.func @rain_model_kernel(%arg0: i32, %arg1: memref<8x16xf32, #tpu.memory_space<vmem>>, %arg2: memref<16x128xbf16, #tpu.memory_space<vmem>>, %arg3: memref<1x128xf32, #tpu.memory_space<vmem>>, %arg4: memref<128x128xbf16, #tpu.memory_space<vmem>>, %arg5: memref<1x128xf32, #tpu.memory_space<vmem>>, %arg6: memref<8x128xf32, #tpu.memory_space<vmem>>) attributes {dimension_semantics = [#tpu.dimension_semantics<parallel>], iteration_bounds = array<i64: 1>, scalar_prefetch = 0 : i64, scratch_operands = 0 : i64, tpu.core_type = #tpu.core_type<tc>, window_params = [{transform_indices = @transform_0, window_bounds = array<i64: 8, 16>}, {pipeline_mode = #tpu.pipeline_mode<synchronous>, transform_indices = @transform_1, window_bounds = array<i64: 16, 128>}, {pipeline_mode = #tpu.pipeline_mode<synchronous>, transform_indices = @transform_2, window_bounds = array<i64: 1, 128>}, {pipeline_mode = #tpu.pipeline_mode<synchronous>, transform_indices = @transform_3, window_bounds = array<i64: 128, 128>}, {pipeline_mode = #tpu.pipeline_mode<synchronous>, transform_indices = @transform_4, window_bounds = array<i64: 1, 128>}, {transform_indices = @transform_5, window_bounds = array<i64: 8, 128>}]} {
    %c0 = arith.constant 0 : index
    %c0_0 = arith.constant 0 : index
    %0 = vector.load %arg1[%c0, %c0_0] : memref<8x16xf32, #tpu.memory_space<vmem>>, vector<8x16xf32>
    %1 = arith.truncf %0 : vector<8x16xf32> to vector<8x16xbf16>
    %c0_1 = arith.constant 0 : index
    %c0_2 = arith.constant 0 : index
    %2 = vector.load %arg2[%c0_1, %c0_2] : memref<16x128xbf16, #tpu.memory_space<vmem>>, vector<16x128xbf16>
    %cst = arith.constant dense<0.000000e+00> : vector<8x128xf32>
    %3 = tpu.matmul %1, %2, %cst {dimension_numbers = #tpu.dot_dimension_numbers<[1], [0], [0], [1], [0, 0, 1, 1], [], []>} : vector<8x16xbf16>, vector<16x128xbf16>, vector<8x128xf32> -> vector<8x128xf32>
    %c0_3 = arith.constant 0 : index
    %c0_4 = arith.constant 0 : index
    %4 = vector.load %arg3[%c0_3, %c0_4] : memref<1x128xf32, #tpu.memory_space<vmem>>, vector<1x128xf32>
    %5 = vector.broadcast %4 : vector<1x128xf32> to vector<8x128xf32>
    %6 = arith.addf %3, %5 : vector<8x128xf32>
    %7 = arith.negf %6 : vector<8x128xf32>
    %8 = math.exp %7 : vector<8x128xf32>
    %cst_5 = arith.constant 1.000000e+00 : f32
    %9 = vector.broadcast %cst_5 : f32 to vector<8x128xf32>
    %10 = arith.addf %9, %8 : vector<8x128xf32>
    %11 = arith.divf %9, %10 : vector<8x128xf32>
    %12 = arith.truncf %11 : vector<8x128xf32> to vector<8x128xbf16>
    %c0_6 = arith.constant 0 : index
    %c0_7 = arith.constant 0 : index
    %13 = vector.load %arg4[%c0_6, %c0_7] : memref<128x128xbf16, #tpu.memory_space<vmem>>, vector<128x128xbf16>
    %cst_8 = arith.constant dense<0.000000e+00> : vector<8x128xf32>
    %14 = tpu.matmul %12, %13, %cst_8 {dimension_numbers = #tpu.dot_dimension_numbers<[1], [0], [0], [1], [0, 0, 1, 1], [], []>} : vector<8x128xbf16>, vector<128x128xbf16>, vector<8x128xf32> -> vector<8x128xf32>
    %c0_9 = arith.constant 0 : index
    %c0_10 = arith.constant 0 : index
    %15 = vector.load %arg5[%c0_9, %c0_10] : memref<1x128xf32, #tpu.memory_space<vmem>>, vector<1x128xf32>
    %16 = vector.broadcast %15 : vector<1x128xf32> to vector<8x128xf32>
    %17 = arith.addf %14, %16 : vector<8x128xf32>
    %c0_11 = arith.constant 0 : index
    %c0_12 = arith.constant 0 : index
    %18 = vector.load %arg6[%c0_11, %c0_12] : memref<8x128xf32, #tpu.memory_space<vmem>>, vector<8x128xf32>
    tpu.vector_store %arg6[%c0_11, %c0_12], %17 {strides = array<i32>} : memref<8x128xf32, #tpu.memory_space<vmem>>, vector<8x128xf32>,
    return
  }
  func.func @transform_0(%arg0: i32) -> (i32, i32) {
    %c0_i32 = arith.constant 0 : i32
    %c0_i32_0 = arith.constant 0 : i32
    return %arg0, %c0_i32 : i32, i32
  }
  func.func @transform_1(%arg0: i32) -> (i32, i32) {
    %c0_i32 = arith.constant 0 : i32
    %c0_i32_0 = arith.constant 0 : i32
    %c0_i32_1 = arith.constant 0 : i32
    return %c0_i32, %c0_i32_0 : i32, i32
  }
  func.func @transform_2(%arg0: i32) -> (i32, i32) {
    %c0_i32 = arith.constant 0 : i32
    %c0_i32_0 = arith.constant 0 : i32
    %c0_i32_1 = arith.constant 0 : i32
    return %c0_i32, %c0_i32_0 : i32, i32
  }
  func.func @transform_3(%arg0: i32) -> (i32, i32) {
    %c0_i32 = arith.constant 0 : i32
    %c0_i32_0 = arith.constant 0 : i32
    %c0_i32_1 = arith.constant 0 : i32
    return %c0_i32, %c0_i32_0 : i32, i32
  }
  func.func @transform_4(%arg0: i32) -> (i32, i32) {
    %c0_i32 = arith.constant 0 : i32
    %c0_i32_0 = arith.constant 0 : i32
    %c0_i32_1 = arith.constant 0 : i32
    return %c0_i32, %c0_i32_0 : i32, i32
  }
  func.func @transform_5(%arg0: i32) -> (i32, i32) {
    %c0_i32 = arith.constant 0 : i32
    %c0_i32_0 = arith.constant 0 : i32
    return %arg0, %c0_i32 : i32, i32
  }
}

</mosaic_0001>

<bundles_post_ra>
// kernel: tpu_custom_call.1
= control target key start
LH: loop header
LB: loop body
LE: loop exit
PB: predicated region body
PF: predicated region fallthrough
CT: control target
= control target key end

     0   :  { %10 = vsyncpa [#allocation3], 0  ;;  %s433_s0 = inlined_call_operand.hbm [shape: f32[8,16], index: 0, kind: input, shape index: {}]   ;;  %s434_s1 = inlined_call_operand.hbm [shape: bf16[16,128], index: 1, kind: input, shape index: {}]   ;;  %s435_s2 = inlined_call_operand.vmem [shape: f32[1,128], index: 2, kind: input, shape index: {}]   ;;  %s436_s3 = inlined_call_operand.hbm [shape: bf16[128,128], index: 3, kind: input, shape index: {}]   ;;  %s437_s4 = inlined_call_operand.vmem [shape: f32[1,128], index: 4, kind: input, shape index: {}]   ;;  %s438_s5 = inlined_call_operand.hbm [shape: f32[8,128], index: 5, kind: output, shape index: {}]  }
   0x1   :  { %11 = vsyncpa [#allocation6], 0  ;;  %s28_s20 = sshll.u32 %s434_s1, 4  ;;  %s29_s20 = int_to_ptr.hbm [resolvable:$true] %s28_s20 }
   0x2   :  { %12 = vsyncpa [#allocation4], 0  ;;  %s379_s21 = smov [#allocation5]   ;;  %s18_s25 = sshll.u32 %s433_s0, 4  ;;  %s19_s25 = int_to_ptr.hbm [resolvable:$true] %s18_s25 }
   0x3   :  { %s30_s22 = sshll.u32 %s379_s21, 4  ;;  %s380_s26 = smov 64   ;;  %s31_s22 = int_to_ptr.vmem [resolvable:$true] %s30_s22 }
   0x4   :  { %s381_s27 = smov 4   ;;  %s382_s28 = smov [#allocation2]  }
   0x5   :  { %36 = dma.hbm_to_vmem [thread:$0]  %s29_s20, 128, %s31_s22, [#allocation6], %s380_s26, %s380_s26, %s381_s27  }
   0x6   :  { %s20_s29 = sshll.u32 %s382_s28, 4  ;;  %s43_s7 = sshll.u32 %s436_s3, 4  ;;  %s21_s29 = int_to_ptr.vmem [resolvable:$true] %s20_s29  ;;  %s44_s7 = int_to_ptr.hbm [resolvable:$true] %s43_s7 }
   0x7   :  { %23 = dma.hbm_to_vmem [thread:$0]  %s19_s25, 128, %s21_s29, [#allocation3]  }
   0x8   :  { %s383_s1 = smov [#allocation7]  }
   0x9   :  { %s45_s8 = sshll.u32 %s383_s1, 4  ;;  %s46_s8 = int_to_ptr.vmem [resolvable:$true] %s45_s8 }
   0xa   :  { %51 = dma.hbm_to_vmem [thread:$0]  %s44_s7, 1024, %s46_s8, [#allocation6], %s380_s26, %s380_s26, %s381_s27  }
   0xb   :  { %373 = dma.done.wait [#allocation3], 128  }
   0xc   :  { %374 = vsyncadd [#allocation3], 4294967168 }
   0xd   :  { %375 = dma.done.wait [#allocation6], 1152  }
   0xe   :  { %376 = vsyncadd [#allocation6], 4294966144  ;;  %v256_v0 = vld [vmem:[#allocation5] sm:$0xff]  ;;  %v67_v1 = vld [vmem:[#allocation2] sm:$0xff]  ;;  %vm81_vm0 = vcmask 130048   ;;  %s384_s10 = smov [#allocation8]  }
   0xf   :  { %v68_v2 = vpack.c.bf16 %v67_v1, %v67_v1  ;;  %92 = vmatpush.bf16.msra.mxu0 %v256_v0  ;;  %v264_v3 = vld [vmem:[#allocation7 + $0x38] sm:$0xff]  ;;  %v263_v4 = vld [vmem:[#allocation7 + $0x30] sm:$0xff]  ;;  %v262_v5 = vld [vmem:[#allocation7 + $0x28] sm:$0xff]  ;;  %s205_s11 = sshll.u32 %s384_s10, 4  ;;  %s207_s14 = sshll.u32 %s438_s5, 4  ;;  %s206_s11 = int_to_ptr.vmem [resolvable:$true] %s205_s11  ;;  %s208_s14 = int_to_ptr.hbm [resolvable:$true] %s207_s14 }
  0x10   :  { %186 = vmatpush.bf16.msra.mxu1 %v264_v3  ;;  %v261_v6 = vld [vmem:[#allocation7 + $0x20] sm:$0xff]  ;;  %v260_v7 = vld [vmem:[#allocation7 + $0x18] sm:$0xff]  ;;  %v259_v8 = vld [vmem:[#allocation7 + $0x10] sm:$0xff] }
  0x11   :  { %v258_v9 = vld [vmem:[#allocation7 + $0x8] sm:$0xff]  ;;  %v257_v10 = vld [vmem:[#allocation7] sm:$0xff]  ;;  %v271_v11 = vld [vmem:[%s435_s2] ss:$0 sm:$0xff] }
  0x12   :  { %222 = vmatmul.msk.bf16.vlgmr.msra.gmra.mxu0 %vm81_vm0, %v68_v2  ;;  %v272_v29 = vld [vmem:[%s437_s4] ss:$0 sm:$0xff] }
  0x14   :  { %187 = vmatpush.bf16.msra.mxu1 %v263_v4 }
  0x18   :  { %188 = vmatpush.bf16.msra.mxu1 %v262_v5 }
  0x1c   :  { %189 = vmatpush.bf16.msra.mxu1 %v261_v6 }
  0x20   :  { %190 = vmatpush.bf16.msra.mxu1 %v260_v7 }
  0x24   :  { %191 = vmatpush.bf16.msra.mxu1 %v259_v8 }
  0x28   :  { %192 = vmatpush.bf16.msra.mxu1 %v258_v9 }
  0x2c   :  { %193 = vmatpush.bf16.msra.mxu1 %v257_v10 }
  0x8f   :  { %v94_v12 = vpop.f32.mrf.mxu0 }
  0x90   :  { %v95_v13 = vadd.f32 %v271_v11, %v94_v12 }
  0x92   :  { %v223_v14 = vmul.f32 -1.442695, %v95_v13 }
  0x94   :  { %273 = vpow2.f32 %v223_v14 }
  0x97   :  { %v96_v15 = vpop.f32.mrf.mxu0 }
  0x9a   :  { %v274_v16 = vpop.eup %273 }
  0x9b   :  { %v101_v17 = vadd.f32 1.0, %v274_v16 }
  0x9d   :  { %275 = vrcp.f32 %v101_v17  ;;  %v113_v21 = vand.u32 2147483648, %v101_v17  ;;  %v111_v23 = vand.u32 2147483647, %v101_v17  ;;  %vm107_vm2 = vweird.f32 %v101_v17 }
  0x9f   :  { %v114_v25 = vor.u32 1.1754944e-38, %v113_v21  ;;  %vm112_vm4 = vcmp.eq.f32.partialorder %v111_v23, 8.507059e+37 }
  0xa3   :  { %v276_v18 = vpop.eup %275 }
  0xa4   :  { %v103_v19 = vmul.f32 %v276_v18, %v101_v17  ;;  %vm108_vm1 = vweird.f32 %v276_v18 }
  0xa5   :  { %vm109_vm3 = vmor %vm107_vm2, %vm108_vm1 }
  0xa6   :  { %v104_v20 = vsub.f32 1.0, %v103_v19 }
  0xa8   :  { %v105_v22 = vmul.f32 %v276_v18, %v104_v20 }
  0xaa   :  { %v106_v24 = vadd.f32 %v276_v18, %v105_v22 }
  0xac   :  { %v110_v26 = vsel %vm109_vm3, %v276_v18, %v106_v24 }
  0xad   :  { %v115_v27 = vsel %vm112_vm4, %v114_v25, %v110_v26 }
  0xae   :  { %v117_v28 = vpack.c.bf16 %v115_v27, %v115_v27 }
  0xb0   :  { %194 = vmatmul.bf16.vlgmr.msra.gmra.mxu1 %v117_v28 }
 0x12d   :  { %v195_v30 = vpop.f32.mrf.mxu1 }
 0x12e   :  { %v196_v31 = vadd.f32 %v272_v29, %v195_v30 }
 0x130   :  { %199 = vst [vmem:[#allocation8] sm:$0xff] %v196_v31 }
 0x131   :  { %210 = dma.vmem_to_hbm [thread:$0]  %s206_s11, 128, %s208_s14, [#allocation4]  }
 0x135   :  { %v197_v32 = vpop.f32.mrf.mxu1 }
 0x136   :  { %377 = dma.done.wait [#allocation4], 128  }
 0x137   :  { %378 = vsyncadd [#allocation4], 4294967168 }
 0x138   :  { %215 = vsyncpa [#allocation3], 1 }
 0x139   :  { %216 = vsyncpa [#allocation6], 1 }
 0x13a   :  { %217 = vsyncpa [#allocation4], 1 }

</bundles_post_ra>
